<compile_context>
chip_gen: v7x
topology: tpu7x:2x2x1
jax: 0.10.0
libtpu: 0.0.40
codegen_flags: <defaults>
</compile_context>

<pallas_src>
import functools

import jax
import jax.numpy as jnp
from jax.experimental import pallas as pl
from jax.experimental.pallas import tpu as pltpu

H, W = 8, 16
NPIX = H * W            # 128 pixels -> exactly one lane width
AMP_COLS = 16           # 9 real amplitude columns, padded to 16 (last dim == full array dim)
LOBE_COLS = 8           # per-lobe row: [s*lx, s*ly, s*lz, s, 0, 0, 0, 0]
MAX_TB = 1024           # batch-tile cap (amortizes ~0.35us/step, stays far inside scoped VMEM)


def _cdiv(a, b):
    return -(-a // b)


def _round_up(x, m):
    return _cdiv(x, m) * m


def _sg_directions(h, w):
    """Equirectangular unit directions, shape (3, h*w)."""
    theta = (jnp.arange(h, dtype=jnp.float32) + 0.5) / h * jnp.pi
    phi = (jnp.arange(w, dtype=jnp.float32) + 0.5) / w * (2.0 * jnp.pi)
    st, ct = jnp.sin(theta), jnp.cos(theta)
    dx = st[:, None] * jnp.cos(phi)[None, :]
    dy = st[:, None] * jnp.sin(phi)[None, :]
    dz = jnp.broadcast_to(ct[:, None], (h, w))
    return jnp.stack([dx, dy, dz], axis=0).reshape(3, h * w)


# -----------------------------------------------------------------------------
# Pallas kernel: one grid step renders TB spherical-gaussian env maps
# (3 tiny MXU matmuls for the lobe exponents + EUP exp + VPU combine),
# accumulates the squared error elementwise and writes a sublane/lane-dense
# (8, 128) partial sum for this batch tile.
# -----------------------------------------------------------------------------
def _lsc_light_kernel(env_ref, lobes_ref, amps_ref, dirs_ref, out_ref):
    tb = amps_ref.shape[0]                     # batch-tile size (multiple of 8)
    npix = env_ref.shape[2]                    # 128

    dirs = dirs_ref[...]                       # (8, npix): rows 0..2 = dx,dy,dz, row 3 = -1

    # Per-lobe exponent on the MXU:  e_k[b, p] = s_k*lx*dx + s_k*ly*dy + s_k*lz*dz - s_k
    #                                         = s_k * (<l_hat_k, d_p> - 1)
    # Keep f32 (precision=HIGHEST): bf16 dot error x s (up to ~25) inside exp would exceed 1e-3.
    gs = []
    for k in range(3):
        e_k = jnp.dot(lobes_ref[k], dirs,
                      preferred_element_type=jnp.float32,
                      precision=jax.lax.Precision.HIGHEST)      # (tb, npix)
        gs.append(jnp.exp(e_k))                                  # EUP

    amps = amps_ref[...]                       # (tb, AMP_COLS); col 3k+r = c[k, rgb=r]
    sq = jnp.zeros((tb, npix), jnp.float32)
    for r in range(3):
        env_r = (amps[:, r:r + 1] * gs[0]
                 + amps[:, 3 + r:4 + r] * gs[1]
                 + amps[:, 6 + r:7 + r] * gs[2])                 # (tb, npix)
        d = env_ref[r] - env_r
        sq = sq + d * d

    # Sublane-group partial reduction (tb,128) -> (8,128): pure vreg adds, no XLU.
    out_ref[...] = jnp.sum(sq.reshape(tb // 8, 8, npix), axis=0)


def _choose_tiling(B):
    num_tiles = max(1, _cdiv(B, MAX_TB))
    # v7x has 2 TensorCores per chip; give the "parallel" grid axis >= 2 steps when the batch
    # is big enough that splitting does not hurt per-step-overhead amortization.
    # (static heuristic; harmless on 1-TC v5e/v6e.)
    if num_tiles < 2 and B >= 256:
        num_tiles = 2
    TB = _round_up(_cdiv(B, num_tiles), 8)     # worst-case padding < 8 rows per tile
    B_pad = num_tiles * TB
    return TB, B_pad, num_tiles


@functools.partial(jax.jit, static_argnames=("weight_light", "weight_ambient"))
def lsc_loss(gt_light_env, est_l, est_s, est_c, gt_ambient, est_a,
             weight_light=0.8, weight_ambient=0.2):
    B = gt_light_env.shape[0]
    TB, B_pad, num_tiles = _choose_tiling(B)

    # Ground-truth env maps: channel-major so each per-channel slab is a (B_pad, 128) tile.
    gt_env = gt_light_env.reshape(B, 3, NPIX).astype(jnp.float32)
    gt_env = jnp.pad(gt_env, ((0, B_pad - B), (0, 0), (0, 0)))
    gt_env = jnp.transpose(gt_env, (1, 0, 2))                      # (3, B_pad, NPIX)

    # Fold normalization + sharpness into the lobe operand of the MXU matmul (O(B*21) XLA work).
    l3 = est_l.reshape(B, 3, 3).astype(jnp.float32)
    s3 = est_s.reshape(B, 3).astype(jnp.float32)
    c3 = est_c.reshape(B, 9).astype(jnp.float32)                   # flat index 3*k + rgb
    l_hat = l3 / jnp.sqrt((l3 * l3).sum(axis=2, keepdims=True))    # matches torch.div(l, ||l||)
    l_scaled = l_hat * s3[:, :, None]                              # (B, 3 lobes, 3 xyz)

    lobes = jnp.zeros((3, B_pad, LOBE_COLS), jnp.float32)          # padded rows stay 0 -> g=1, c=0
    lobes = lobes.at[:, :B, 0:3].set(jnp.transpose(l_scaled, (1, 0, 2)))
    lobes = lobes.at[:, :B, 3].set(jnp.transpose(s3, (1, 0)))      # pairs with dirs row 3 = -1

    amps = jnp.zeros((B_pad, AMP_COLS), jnp.float32)
    amps = amps.at[:B, 0:9].set(c3)

    dirs = jnp.zeros((8, NPIX), jnp.float32)
    dirs = dirs.at[0:3, :].set(_sg_directions(H, W))
    dirs = dirs.at[3, :].set(-1.0)

    partial = pl.pallas_call(
        _lsc_light_kernel,
        out_shape=jax.ShapeDtypeStruct((num_tiles, 8, NPIX), jnp.float32),
        grid=(num_tiles,),
        in_specs=[
            pl.BlockSpec((3, TB, NPIX), lambda i: (0, i, 0)),      # gt env tile
            pl.BlockSpec((3, TB, LOBE_COLS), lambda i: (0, i, 0)),  # pre-scaled lobe rows
            pl.BlockSpec((TB, AMP_COLS), lambda i: (i, 0)),        # SG amplitudes
            pl.BlockSpec((8, NPIX), lambda i: (0, 0)),             # constant directions
        ],
        out_specs=pl.BlockSpec((None, 8, NPIX), lambda i: (i, 0, 0)),
        compiler_params=pltpu.CompilerParams(
            dimension_semantics=("parallel",),                     # independent tiles (megacore OK)
            vmem_limit_bytes=32 * 1024 * 1024),
    )(gt_env, lobes, amps, dirs)

    # light_loss = sum_b mean_{c,p}(diff^2) = (total sum of diff^2) / (3 * NPIX)
    light_loss = jnp.sum(partial) / float(3 * NPIX)
    amb = gt_ambient.astype(jnp.float32) - est_a.astype(jnp.float32)
    ambient_loss = jnp.mean(amb * amb)         # tiny O(B) work, done in XLA
    return weight_light * light_loss + weight_ambient * ambient_loss


# Pure-JAX reference (mirrors the PyTorch forward) for verification.
def lsc_loss_ref(gt_light_env, est_l, est_s, est_c, gt_ambient, est_a,
                 weight_light=0.8, weight_ambient=0.2):
    B = gt_light_env.shape[0]
    gt_env = gt_light_env.reshape(B, 3, NPIX).astype(jnp.float32)
    l3 = est_l.reshape(B, 3, 3).astype(jnp.float32)
    l3 = l3 / jnp.sqrt((l3 ** 2).sum(axis=2, keepdims=True))
    s3 = est_s.reshape(B, 3, 1).astype(jnp.float32)
    c3 = est_c.reshape(B, 3, 3).astype(jnp.float32)
    dirs = _sg_directions(H, W)                                           # (3, NPIX)
    dots = (l3[:, :, :, None] * dirs[None, None, :, :]).sum(axis=2)       # (B, 3, NPIX)
    g = jnp.exp(s3 * (dots - 1.0))                                        # (B, 3, NPIX)
    env = (c3[:, :, :, None] * g[:, :, None, :]).sum(axis=1)              # (B, 3rgb, NPIX)
    light = jnp.sum(jnp.mean((gt_env - env) ** 2, axis=(1, 2)))
    amb = jnp.mean((gt_ambient.astype(jnp.float32) - est_a.astype(jnp.float32)) ** 2)
    return weight_light * light + weight_ambient * amb


if __name__ == "__main__":
    B = 2
    key = jax.random.PRNGKey(0)
    k = jax.random.split(key, 6)

    gt_light_env = jax.random.uniform(k[0], (B, 3, H, W), jnp.float32)    # env maps
    est_l = jax.random.normal(k[1], (B, 9), jnp.float32)                  # 3 lobe axes
    est_s = jax.random.uniform(k[2], (B, 3), jnp.float32, 5.0, 25.0)      # sharpness
    est_c = jax.random.uniform(k[3], (B, 9), jnp.float32)                 # 3 RGB amplitudes
    gt_ambient = jax.random.uniform(k[4], (B, 3), jnp.float32)            # ambient RGB
    est_a = jax.random.uniform(k[5], (B, 3), jnp.float32)

    out = lsc_loss(gt_light_env, est_l, est_s, est_c, gt_ambient, est_a)
    out = jax.block_until_ready(out)

    ref = lsc_loss_ref(gt_light_env, est_l, est_s, est_c, gt_ambient, est_a)
    assert jnp.allclose(out, ref, rtol=1e-3, atol=1e-3), (out, ref)

    print("KERNEL_OK")
</pallas_src>

<mosaic_0001>
module attributes {stable_mosaic.version = 11 : i64} {
  func.func @_lsc_light_kernel(%arg0: i32, %arg1: memref<3x8x128xf32, #tpu.memory_space<vmem>>, %arg2: memref<3x8x8xf32, #tpu.memory_space<vmem>>, %arg3: memref<8x16xf32, #tpu.memory_space<vmem>>, %arg4: memref<8x128xf32, #tpu.memory_space<vmem>>, %arg5: memref<1x8x128xf32, #tpu.memory_space<vmem>>) attributes {dimension_semantics = [#tpu.dimension_semantics<parallel>], iteration_bounds = array<i64: 1>, scalar_prefetch = 0 : i64, scratch_operands = 0 : i64, tpu.core_type = #tpu.core_type<tc>, window_params = [{transform_indices = @transform_0, window_bounds = array<i64: 3, 8, 128>}, {transform_indices = @transform_1, window_bounds = array<i64: 3, 8, 8>}, {transform_indices = @transform_2, window_bounds = array<i64: 8, 16>}, {pipeline_mode = #tpu.pipeline_mode<synchronous>, transform_indices = @transform_3, window_bounds = array<i64: 8, 128>}, {transform_indices = @transform_4, window_bounds = array<i64: 1, 8, 128>}]} {
    %c0 = arith.constant 0 : index
    %c0_0 = arith.constant 0 : index
    %0 = vector.load %arg4[%c0, %c0_0] : memref<8x128xf32, #tpu.memory_space<vmem>>, vector<8x128xf32>
    %c0_1 = arith.constant 0 : index
    %c0_2 = arith.constant 0 : index
    %c0_3 = arith.constant 0 : index
    %1 = vector.load %arg2[%c0_1, %c0_2, %c0_3] : memref<3x8x8xf32, #tpu.memory_space<vmem>>, vector<1x8x8xf32>
    %2 = vector.shape_cast %1 : vector<1x8x8xf32> to vector<8x8xf32>
    %cst = arith.constant dense<0.000000e+00> : vector<8x128xf32>
    %3 = tpu.matmul %2, %0, %cst {dimension_numbers = #tpu.dot_dimension_numbers<[1], [0], [0], [1], [0, 0, 1, 1], [], []>, precision = #tpu.contract_precision<fp32>} : vector<8x8xf32>, vector<8x128xf32>, vector<8x128xf32> -> vector<8x128xf32>
    %4 = math.exp %3 : vector<8x128xf32>
    %c1 = arith.constant 1 : index
    %c0_4 = arith.constant 0 : index
    %c0_5 = arith.constant 0 : index
    %5 = vector.load %arg2[%c1, %c0_4, %c0_5] : memref<3x8x8xf32, #tpu.memory_space<vmem>>, vector<1x8x8xf32>
    %6 = vector.shape_cast %5 : vector<1x8x8xf32> to vector<8x8xf32>
    %cst_6 = arith.constant dense<0.000000e+00> : vector<8x128xf32>
    %7 = tpu.matmul %6, %0, %cst_6 {dimension_numbers = #tpu.dot_dimension_numbers<[1], [0], [0], [1], [0, 0, 1, 1], [], []>, precision = #tpu.contract_precision<fp32>} : vector<8x8xf32>, vector<8x128xf32>, vector<8x128xf32> -> vector<8x128xf32>
    %8 = math.exp %7 : vector<8x128xf32>
    %c2 = arith.constant 2 : index
    %c0_7 = arith.constant 0 : index
    %c0_8 = arith.constant 0 : index
    %9 = vector.load %arg2[%c2, %c0_7, %c0_8] : memref<3x8x8xf32, #tpu.memory_space<vmem>>, vector<1x8x8xf32>
    %10 = vector.shape_cast %9 : vector<1x8x8xf32> to vector<8x8xf32>
    %cst_9 = arith.constant dense<0.000000e+00> : vector<8x128xf32>
    %11 = tpu.matmul %10, %0, %cst_9 {dimension_numbers = #tpu.dot_dimension_numbers<[1], [0], [0], [1], [0, 0, 1, 1], [], []>, precision = #tpu.contract_precision<fp32>} : vector<8x8xf32>, vector<8x128xf32>, vector<8x128xf32> -> vector<8x128xf32>
    %12 = math.exp %11 : vector<8x128xf32>
    %c0_10 = arith.constant 0 : index
    %c0_11 = arith.constant 0 : index
    %13 = vector.load %arg3[%c0_10, %c0_11] : memref<8x16xf32, #tpu.memory_space<vmem>>, vector<8x16xf32>
    %cst_12 = arith.constant 0.000000e+00 : f32
    %14 = vector.broadcast %cst_12 : f32 to vector<8x128xf32>
    %15 = vector.extract_strided_slice %13 {offsets = [0, 0], sizes = [8, 1], strides = [1, 1]} : vector<8x16xf32> to vector<8x1xf32>
    %16 = vector.broadcast %15 : vector<8x1xf32> to vector<8x128xf32>
    %17 = arith.mulf %16, %4 : vector<8x128xf32>
    %18 = vector.extract_strided_slice %13 {offsets = [0, 3], sizes = [8, 1], strides = [1, 1]} : vector<8x16xf32> to vector<8x1xf32>
    %19 = vector.broadcast %18 : vector<8x1xf32> to vector<8x128xf32>
    %20 = arith.mulf %19, %8 : vector<8x128xf32>
    %21 = arith.addf %17, %20 : vector<8x128xf32>
    %22 = vector.extract_strided_slice %13 {offsets = [0, 6], sizes = [8, 1], strides = [1, 1]} : vector<8x16xf32> to vector<8x1xf32>
    %23 = vector.broadcast %22 : vector<8x1xf32> to vector<8x128xf32>
    %24 = arith.mulf %23, %12 : vector<8x128xf32>
    %25 = arith.addf %21, %24 : vector<8x128xf32>
    %c0_13 = arith.constant 0 : index
    %c0_14 = arith.constant 0 : index
    %c0_15 = arith.constant 0 : index
    %26 = vector.load %arg1[%c0_13, %c0_14, %c0_15] : memref<3x8x128xf32, #tpu.memory_space<vmem>>, vector<1x8x128xf32>
    %27 = vector.shape_cast %26 : vector<1x8x128xf32> to vector<8x128xf32>
    %28 = arith.subf %27, %25 : vector<8x128xf32>
    %29 = arith.mulf %28, %28 : vector<8x128xf32>
    %30 = arith.addf %14, %29 : vector<8x128xf32>
    %31 = vector.extract_strided_slice %13 {offsets = [0, 1], sizes = [8, 1], strides = [1, 1]} : vector<8x16xf32> to vector<8x1xf32>
    %32 = vector.broadcast %31 : vector<8x1xf32> to vector<8x128xf32>
    %33 = arith.mulf %32, %4 : vector<8x128xf32>
    %34 = vector.extract_strided_slice %13 {offsets = [0, 4], sizes = [8, 1], strides = [1, 1]} : vector<8x16xf32> to vector<8x1xf32>
    %35 = vector.broadcast %34 : vector<8x1xf32> to vector<8x128xf32>
    %36 = arith.mulf %35, %8 : vector<8x128xf32>
    %37 = arith.addf %33, %36 : vector<8x128xf32>
    %38 = vector.extract_strided_slice %13 {offsets = [0, 7], sizes = [8, 1], strides = [1, 1]} : vector<8x16xf32> to vector<8x1xf32>
    %39 = vector.broadcast %38 : vector<8x1xf32> to vector<8x128xf32>
    %40 = arith.mulf %39, %12 : vector<8x128xf32>
    %41 = arith.addf %37, %40 : vector<8x128xf32>
    %c1_16 = arith.constant 1 : index
    %c0_17 = arith.constant 0 : index
    %c0_18 = arith.constant 0 : index
    %42 = vector.load %arg1[%c1_16, %c0_17, %c0_18] : memref<3x8x128xf32, #tpu.memory_space<vmem>>, vector<1x8x128xf32>
    %43 = vector.shape_cast %42 : vector<1x8x128xf32> to vector<8x128xf32>
    %44 = arith.subf %43, %41 : vector<8x128xf32>
    %45 = arith.mulf %44, %44 : vector<8x128xf32>
    %46 = arith.addf %30, %45 : vector<8x128xf32>
    %47 = vector.extract_strided_slice %13 {offsets = [0, 2], sizes = [8, 1], strides = [1, 1]} : vector<8x16xf32> to vector<8x1xf32>
    %48 = vector.broadcast %47 : vector<8x1xf32> to vector<8x128xf32>
    %49 = arith.mulf %48, %4 : vector<8x128xf32>
    %50 = vector.extract_strided_slice %13 {offsets = [0, 5], sizes = [8, 1], strides = [1, 1]} : vector<8x16xf32> to vector<8x1xf32>
    %51 = vector.broadcast %50 : vector<8x1xf32> to vector<8x128xf32>
    %52 = arith.mulf %51, %8 : vector<8x128xf32>
    %53 = arith.addf %49, %52 : vector<8x128xf32>
    %54 = vector.extract_strided_slice %13 {offsets = [0, 8], sizes = [8, 1], strides = [1, 1]} : vector<8x16xf32> to vector<8x1xf32>
    %55 = vector.broadcast %54 : vector<8x1xf32> to vector<8x128xf32>
    %56 = arith.mulf %55, %12 : vector<8x128xf32>
    %57 = arith.addf %53, %56 : vector<8x128xf32>
    %c2_19 = arith.constant 2 : index
    %c0_20 = arith.constant 0 : index
    %c0_21 = arith.constant 0 : index
    %58 = vector.load %arg1[%c2_19, %c0_20, %c0_21] : memref<3x8x128xf32, #tpu.memory_space<vmem>>, vector<1x8x128xf32>
    %59 = vector.shape_cast %58 : vector<1x8x128xf32> to vector<8x128xf32>
    %60 = arith.subf %59, %57 : vector<8x128xf32>
    %61 = arith.mulf %60, %60 : vector<8x128xf32>
    %62 = arith.addf %46, %61 : vector<8x128xf32>
    %63 = vector.shape_cast %62 : vector<8x128xf32> to vector<1x8x128xf32>
    %cst_22 = arith.constant dense<0.000000e+00> : vector<8x128xf32>
    %64 = vector.multi_reduction <add>, %63, %cst_22 [0] : vector<1x8x128xf32> to vector<8x128xf32>
    %c0_23 = arith.constant 0 : index
    %c0_24 = arith.constant 0 : index
    %c0_25 = arith.constant 0 : index
    %65 = vector.load %arg5[%c0_23, %c0_24, %c0_25] : memref<1x8x128xf32, #tpu.memory_space<vmem>>, vector<1x8x128xf32>
    %66 = vector.shape_cast %65 : vector<1x8x128xf32> to vector<8x128xf32>
    %67 = vector.shape_cast %64 : vector<8x128xf32> to vector<1x8x128xf32>
    tpu.vector_store %arg5[%c0_23, %c0_24, %c0_25], %67 {strides = array<i32>} : memref<1x8x128xf32, #tpu.memory_space<vmem>>, vector<1x8x128xf32>,
    return
  }
  func.func @transform_0(%arg0: i32) -> (i32, i32, i32) {
    %c0_i32 = arith.constant 0 : i32
    %c0_i32_0 = arith.constant 0 : i32
    %c0_i32_1 = arith.constant 0 : i32
    return %c0_i32, %arg0, %c0_i32_0 : i32, i32, i32
  }
  func.func @transform_1(%arg0: i32) -> (i32, i32, i32) {
    %c0_i32 = arith.constant 0 : i32
    %c0_i32_0 = arith.constant 0 : i32
    %c0_i32_1 = arith.constant 0 : i32
    return %c0_i32, %arg0, %c0_i32_0 : i32, i32, i32
  }
  func.func @transform_2(%arg0: i32) -> (i32, i32) {
    %c0_i32 = arith.constant 0 : i32
    %c0_i32_0 = arith.constant 0 : i32
    return %arg0, %c0_i32 : i32, i32
  }
  func.func @transform_3(%arg0: i32) -> (i32, i32) {
    %c0_i32 = arith.constant 0 : i32
    %c0_i32_0 = arith.constant 0 : i32
    %c0_i32_1 = arith.constant 0 : i32
    return %c0_i32, %c0_i32_0 : i32, i32
  }
  func.func @transform_4(%arg0: i32) -> (i32, i32, i32) {
    %c0_i32 = arith.constant 0 : i32
    %c0_i32_0 = arith.constant 0 : i32
    %c0_i32_1 = arith.constant 0 : i32
    return %arg0, %c0_i32, %c0_i32_0 : i32, i32, i32
  }
}

</mosaic_0001>

<bundles_post_ra>
// kernel: lsc_loss.1
= control target key start
LH: loop header
LB: loop body
LE: loop exit
PB: predicated region body
PF: predicated region fallthrough
CT: control target
= control target key end

     0   :  { %vm19_vm0 = vcmask 64512   ;;  %v1635_v0 = vmov 0.0   ;;  %vm1636_vm1 = vmmov 0   ;;  %v1637_v7 = vmov 1   ;;  %s1819_s3 = inlined_call_operand.vmem [shape: f32[8,128], index: 3, kind: input, shape index: {}]   ;;  %s1820_s1 = inlined_call_operand.vmem [shape: f32[3,8,8], index: 1, kind: input, shape index: {}]   ;;  %s1821_s2 = inlined_call_operand.vmem [shape: f32[8,16], index: 2, kind: input, shape index: {}]   ;;  %s1822_s0 = inlined_call_operand.vmem [shape: f32[3,8,128], index: 0, kind: input, shape index: {}]   ;;  %s1823_s4 = inlined_call_operand.vmem [shape: f32[1,8,128], index: 4, kind: output, shape index: {}]  }
   0x1   :  { %1505 = vmatprep.subr.mxu0 %v1635_v0  ;;  %v17_v1 = vld [vmem:[%s1819_s3] sm:$0xff]  ;;  %1507 = vmatprep.mubr.msk.f32.mxu0 %vm1636_vm1, %v1635_v0  ;;  %v1451_v6 = vld [vmem:[%s1820_s1 + $0x10] sm:$0xff]  ;;  %v1638_v9 = vmov 0   ;;  %v1450_v15 = vld [vmem:[%s1820_s1 + $0x8] sm:$0xff]  ;;  %v1639_v22 = vmov 4   ;;  %v1640_v23 = vmov 3  }
   0x2   :  { %v18_v2 = vld [vmem:[%s1820_s1] sm:$0xff]  ;;  %v1680_v3 = vand.u32 4294901760, %v17_v1  ;;  %1490 = vmatprep.subr.mxu1 %v1635_v0  ;;  %1492 = vmatprep.mubr.msk.f32.mxu1 %vm1636_vm1, %v1635_v0  ;;  %v927_v13 = vsel %vm19_vm0, %v1451_v6, 0  ;;  %v474_v20 = vsel %vm19_vm0, %v1450_v15, 0  ;;  %v1641_v26 = vmov 6  }
   0x3   :  { %v21_v4 = vsel %vm19_vm0, %v18_v2, 0  ;;  %1622 = vset.pattern.permute.xlu1 %v1637_v7  ;;  %v1694_v8 = vld [vmem:[%s1821_s2] sm:$0xff]  ;;  %1620 = vset.pattern.permute.xlu0 %v1638_v9  ;;  %v1719_v18 = vand.u32 4294901760, %v927_v13  ;;  %v1730_v25 = vand.u32 4294901760, %v474_v20  ;;  %v1642_v29 = vmov 7  }
   0x4   :  { %v1686_v5 = vand.u32 4294901760, %v21_v4  ;;  %1506 = vmatpush3.msra.mxu0 %v1680_v3  ;;  %1491 = vmatpush3.msra.mxu1 %v1680_v3  ;;  %v1699_v10 = vsub.f32 %v17_v1, %v1680_v3  ;;  %v1643_v32 = vmov 2   ;;  %v1644_v33 = vmov 8  }
   0x5   :  { %1495 = vmatprep.subr.mxu1 %v1635_v0  ;;  %1510 = vmatprep.subr.mxu0 %v1635_v0  ;;  %v1728_v24 = vsub.f32 %v927_v13, %v1719_v18  ;;  %v543_v28 = vsub.f32 %v474_v20, %v1730_v25  ;;  %v1645_v36 = vmov 5  }
   0x6   :  { %v1702_v11 = vsub.f32 %v21_v4, %v1686_v5  ;;  %v1707_v12 = vand.u32 4294901760, %v1699_v10  ;;  %1401 = vperm.xlu1 %1622, %v1694_v8   ;;  %1380 = vperm.xlu0 %1620, %v1694_v8  }
   0x7   :  { %v997_v27 = vand.u32 4294901760, %v1728_v24  ;;  %v544_v31 = vand.u32 4294901760, %v543_v28 }
   0x8   :  { %v91_v14 = vand.u32 4294901760, %v1702_v11  ;;  %v103_v16 = vsub.f32 %v1699_v10, %v1707_v12 }
   0x9   :  { %v998_v30 = vsub.f32 %v1728_v24, %v997_v27  ;;  %v545_v35 = vsub.f32 %v543_v28, %v544_v31 }
   0xa   :  { %1508 = vmatmul.mubr.f32.vlgmr.msra.gmra.mrb[0].mxu0 %v91_v14  ;;  %v92_v17 = vsub.f32 %v1702_v11, %v91_v14  ;;  %v104_v19 = vand.u32 4294901760, %v103_v16  ;;  %1623 = vset.pattern.permute.xlu1 %v1639_v22 }
   0xb   :  { %1511 = vmatpush3.msra.mxu0 %v1707_v12  ;;  %1512 = vmatprep.mubr.msk.f32.mxu0 %vm1636_vm1, %v1635_v0  ;;  %v999_v34 = vand.u32 4294901760, %v998_v30  ;;  %v546_v37 = vand.u32 4294901760, %v545_v35 }
   0xc   :  { %v93_v21 = vand.u32 4294901760, %v92_v17  ;;  %1515 = vmatprep.subr.mxu0 %v1635_v0  ;;  %1406 = vperm.xlu1 %1623, %v1694_v8  }
   0xd   :  { %1621 = vset.pattern.permute.xlu0 %v1640_v23 }
   0xe   :  { %1493 = vmatmul.mubr.f32.vlgmr.msra.gmra.mrb[0].mxu1 %v93_v21  ;;  %1385 = vperm.xlu0 %1621, %v1694_v8  }
   0xf   :  { %1496 = vmatpush3.msra.mxu1 %v104_v19  ;;  %1497 = vmatprep.mubr.msk.f32.mxu1 %vm1636_vm1, %v1635_v0 }
  0x10   :  { %1500 = vmatprep.subr.mxu1 %v1635_v0  ;;  %1624 = vset.pattern.permute.xlu1 %v1641_v26 }
  0x11   :  { %1391 = vperm.xlu1 %1624, %v1694_v8  }
  0x12   :  { %1513 = vmatmul.mubr.f32.vlgmr.msra.gmra.mrb[0].mxu0 %v1686_v5  ;;  %1625 = vset.pattern.permute.xlu0 %v1642_v29 }
  0x13   :  { %1516 = vmatpush3.msra.mxu0 %v1680_v3  ;;  %1517 = vmatprep.mubr.msk.f32.mxu0 %vm1636_vm1, %v1635_v0 }
  0x14   :  { %1550 = vmatprep.subr.mxu0 %v1635_v0  ;;  %1412 = vperm.xlu0 %1625, %v1694_v8  }
  0x15   :  { %1626 = vset.pattern.permute.xlu1 %v1643_v32 }
  0x16   :  { %1498 = vmatmul.mubr.f32.vlgmr.msra.gmra.mrb[0].mxu1 %v1686_v5  ;;  %1423 = vperm.xlu1 %1626, %v1694_v8  }
  0x17   :  { %1501 = vmatpush3.msra.mxu1 %v1699_v10  ;;  %1502 = vmatprep.mubr.msk.f32.mxu1 %vm1636_vm1, %v1635_v0 }
  0x18   :  { %1520 = vmatprep.subr.mxu1 %v1635_v0  ;;  %1628 = vset.pattern.permute.xlu0 %v1644_v33 }
  0x19   :  { %1434 = vperm.xlu0 %1628, %v1694_v8  }
  0x1a   :  { %1518 = vmatmul.mubr.f32.vlgmr.msra.gmra.mrb[0].mxu0 %v1686_v5  ;;  %1627 = vset.pattern.permute.xlu1 %v1645_v36 }
  0x1b   :  { %1551 = vmatpush3.msra.mxu0 %v1680_v3  ;;  %1552 = vmatprep.mubr.msk.f32.mxu0 %vm1636_vm1, %v1635_v0 }
  0x1c   :  { %1555 = vmatprep.subr.mxu0 %v1635_v0  ;;  %1428 = vperm.xlu1 %1627, %v1694_v8  }
  0x1e   :  { %1503 = vmatmul.mubr.f32.vlgmr.msra.gmra.mrb[0].mxu1 %v1702_v11  ;;  %1553 = vmatmul.mubr.f32.vlgmr.msra.gmra.mrb[2].mxu0 %v999_v34  ;;  %v1452_v11 = vld [vmem:[%s1822_s0 + $0x8] sm:$0xff] }
  0x1f   :  { %1521 = vmatpush3.msra.mxu1 %v1680_v3  ;;  %1522 = vmatprep.mubr.msk.f32.mxu1 %vm1636_vm1, %v1635_v0 }
  0x20   :  { %1525 = vmatprep.subr.mxu1 %v1635_v0  ;;  %1556 = vmatpush3.msra.mxu0 %v104_v19 }
  0x21   :  { %1557 = vmatprep.mubr.msk.f32.mxu0 %vm1636_vm1, %v1635_v0  ;;  %1560 = vmatprep.subr.mxu0 %v1635_v0 }
  0x22   :  { %1523 = vmatmul.mubr.f32.vlgmr.msra.gmra.mrb[2].mxu1 %v546_v37 }
  0x23   :  { %1526 = vmatpush3.msra.mxu1 %v104_v19  ;;  %1527 = vmatprep.mubr.msk.f32.mxu1 %vm1636_vm1, %v1635_v0 }
  0x24   :  { %1530 = vmatprep.subr.mxu1 %v1635_v0 }
  0x26   :  { %1558 = vmatmul.mubr.f32.vlgmr.msra.gmra.mrb[2].mxu0 %v1719_v18 }
  0x27   :  { %1561 = vmatpush3.msra.mxu0 %v1699_v10  ;;  %1562 = vmatprep.mubr.msk.f32.mxu0 %vm1636_vm1, %v1635_v0 }
  0x28   :  { %1565 = vmatprep.subr.mxu0 %v1635_v0 }
  0x2a   :  { %1528 = vmatmul.mubr.f32.vlgmr.msra.gmra.mrb[2].mxu1 %v1730_v25 }
  0x2b   :  { %1531 = vmatpush3.msra.mxu1 %v1699_v10  ;;  %1532 = vmatprep.mubr.msk.f32.mxu1 %vm1636_vm1, %v1635_v0  ;;  %v1396_v10 = vld [vmem:[%s1822_s0] sm:$0xff] }
  0x2c   :  { %1535 = vmatprep.subr.mxu1 %v1635_v0 }
  0x2e   :  { %1563 = vmatmul.mubr.f32.vlgmr.msra.gmra.mrb[2].mxu0 %v1728_v24 }
  0x2f   :  { %1566 = vmatpush3.msra.mxu0 %v1680_v3  ;;  %1567 = vmatprep.mubr.msk.f32.mxu0 %vm1636_vm1, %v1635_v0 }
  0x30   :  { %1570 = vmatprep.subr.mxu0 %v1635_v0 }
  0x32   :  { %1533 = vmatmul.mubr.f32.vlgmr.msra.gmra.mrb[2].mxu1 %v543_v28 }
  0x33   :  { %1536 = vmatpush3.msra.mxu1 %v1680_v3  ;;  %1537 = vmatprep.mubr.msk.f32.mxu1 %vm1636_vm1, %v1635_v0 }
  0x34   :  { %1540 = vmatprep.subr.mxu1 %v1635_v0 }
  0x36   :  { %1568 = vmatmul.mubr.f32.vlgmr.msra.gmra.mrb[2].mxu0 %v997_v27 }
  0x37   :  { %1571 = vmatpush3.msra.mxu0 %v1707_v12  ;;  %1572 = vmatprep.mubr.msk.f32.mxu0 %vm1636_vm1, %v1635_v0 }
  0x38   :  { %1575 = vmatprep.subr.mxu0 %v1635_v0 }
  0x3a   :  { %1538 = vmatmul.mubr.f32.vlgmr.msra.gmra.mrb[2].mxu1 %v544_v31 }
  0x3b   :  { %1541 = vmatpush3.msra.mxu1 %v1707_v12  ;;  %1542 = vmatprep.mubr.msk.f32.mxu1 %vm1636_vm1, %v1635_v0  ;;  %v1453_v12 = vld [vmem:[%s1822_s0 + $0x10] sm:$0xff] }
  0x3c   :  { %1545 = vmatprep.subr.mxu1 %v1635_v0 }
  0x3e   :  { %1573 = vmatmul.mubr.f32.vlgmr.msra.gmra.mrb[2].mxu0 %v1719_v18 }
  0x3f   :  { %1576 = vmatpush3.msra.mxu0 %v1680_v3  ;;  %1577 = vmatprep.mubr.msk.f32.mxu0 %vm1636_vm1, %v1635_v0 }
  0x42   :  { %1543 = vmatmul.mubr.f32.vlgmr.msra.gmra.mrb[2].mxu1 %v1730_v25 }
  0x43   :  { %1546 = vmatpush3.msra.mxu1 %v1680_v3  ;;  %1547 = vmatprep.mubr.msk.f32.mxu1 %vm1636_vm1, %v1635_v0 }
  0x46   :  { %1578 = vmatmul.mubr.f32.vlgmr.msra.gmra.mrb[2].mxu0 %v1719_v18 }
  0x4a   :  { %1548 = vmatmul.mubr.f32.vlgmr.msra.gmra.mrb[2].mxu1 %v1730_v25 }
  0x85   :  { %v1402_v43 = vpop.permute.xlu1 %1401  ;;  %v1381_v47 = vpop.permute.xlu0 %1380 }
  0x8b   :  { %v1407_v44 = vpop.permute.xlu1 %1406 }
  0x8d   :  { %v1386_v53 = vpop.permute.xlu0 %1385 }
  0x90   :  { %v1392_v50 = vpop.permute.xlu1 %1391 }
  0x93   :  { %v1413_v56 = vpop.permute.xlu0 %1412 }
  0x95   :  { %v1424_v55 = vpop.permute.xlu1 %1423 }
  0x98   :  { %v1435_v63 = vpop.permute.xlu0 %1434 }
  0x9b   :  { %v1429_v58 = vpop.permute.xlu1 %1428 }
  0xed   :  { %v465_v38 = vpop.f32.mrb[0].mxu0 }
  0xee   :  { %v1519_v39 = vpop.f32.mrb[1].mxu0 }
  0xf1   :  { %v245_v40 = vpop.f32.mrb[0].mxu1 }
  0xf2   :  { %v1580_v41 = vadd.f32 %v465_v38, %v245_v40  ;;  %v1504_v42 = vpop.f32.mrb[1].mxu1 }
  0xf4   :  { %v469_v45 = vmul.f32 1.442695, %v1580_v41 }
  0xf6   :  { %1629 = vpow2.f32 %v469_v45 }
 0x100   :  { %v1630_v57 = vpop.eup %1629 }
 0x101   :  { %v1404_v61 = vmul.f32 %v1630_v57, %v1402_v43  ;;  %v1426_v62 = vmul.f32 %v1630_v57, %v1424_v55  ;;  %v1383_v0 = vmul.f32 %v1630_v57, %v1381_v47 }
 0x119   :  { %v1371_v46 = vpop.f32.mrb[2].mxu0 }
 0x11a   :  { %v1579_v48 = vpop.f32.mrb[3].mxu0  ;;  %v1375_v49 = vmul.f32 1.442695, %v1371_v46 }
 0x11c   :  { %1631 = vpow2.f32 %v1375_v49 }
 0x11d   :  { %v918_v51 = vpop.f32.mrb[2].mxu1 }
 0x11e   :  { %v922_v52 = vmul.f32 1.442695, %v918_v51  ;;  %v1549_v54 = vpop.f32.mrb[3].mxu1 }
 0x120   :  { %1633 = vpow2.f32 %v922_v52 }
 0x126   :  { %v1632_v59 = vpop.eup %1631 }
 0x127   :  { %v1394_v4 = vmul.f32 %v1632_v59, %v1392_v50  ;;  %v1415_v5 = vmul.f32 %v1632_v59, %v1413_v56  ;;  %v1437_v8 = vmul.f32 %v1632_v59, %v1435_v63 }
 0x12a   :  { %v1634_v60 = vpop.eup %1633 }
 0x12b   :  { %v1388_v1 = vmul.f32 %v1634_v60, %v1386_v53  ;;  %v1409_v2 = vmul.f32 %v1634_v60, %v1407_v44  ;;  %v1431_v3 = vmul.f32 %v1634_v60, %v1429_v58 }
 0x12d   :  { %v1389_v6 = vadd.f32 %v1388_v1, %v1383_v0  ;;  %v1410_v7 = vadd.f32 %v1409_v2, %v1404_v61  ;;  %v1432_v9 = vadd.f32 %v1431_v3, %v1426_v62 }
 0x12f   :  { %v1395_v13 = vadd.f32 %v1394_v4, %v1389_v6  ;;  %v1416_v14 = vadd.f32 %v1415_v5, %v1410_v7  ;;  %v1438_v15 = vadd.f32 %v1437_v8, %v1432_v9 }
 0x131   :  { %v1397_v16 = vsub.f32 %v1396_v10, %v1395_v13  ;;  %v1419_v17 = vsub.f32 %v1452_v11, %v1416_v14  ;;  %v1441_v18 = vsub.f32 %v1453_v12, %v1438_v15 }
 0x133   :  { %v1398_v19 = vmul.f32 %v1397_v16, %v1397_v16  ;;  %v1420_v20 = vmul.f32 %v1419_v17, %v1419_v17  ;;  %v1442_v22 = vmul.f32 %v1441_v18, %v1441_v18 }
 0x135   :  { %v1421_v21 = vadd.f32 %v1420_v20, %v1398_v19 }
 0x137   :  { %v1443_v23 = vadd.f32 %v1442_v22, %v1421_v21 }
 0x139   :  { %1445 = vst [vmem:[%s1823_s4] sm:$0xff] %v1443_v23 }

</bundles_post_ra>
